<compile_context>
chip_gen: v5e
topology: v5e:2x2
jax: 0.10.0
libtpu: 0.0.40
codegen_flags: <defaults>
</compile_context>

<pallas_src>
import jax
import jax.numpy as jnp
from jax.experimental import pallas as pl
from jax.experimental.pallas import tpu as pltpu


def _round_up(n, m):
    return ((n + m - 1) // m) * m


def _largest_divisor_leq(n, cap):
    for d in range(min(n, cap), 0, -1):
        if n % d == 0:
            return d
    return 1


# ---------------------------------------------------------------------------
# Kernel 1: hoisted input projection  xw = x_flat @ W_ih^T + (b_ih + b_hh)
# ---------------------------------------------------------------------------
def _input_proj_kernel(x_ref, wih_ref, b_ref, xw_ref):
    xw_ref[...] = (
        jnp.dot(x_ref[...], wih_ref[...], preferred_element_type=jnp.float32)
        + b_ref[...]
    )


# ---------------------------------------------------------------------------
# Kernel 2: the serial recurrence, one time-chunk (Tc steps) per grid step.
# Grid = (batch_blocks, T // Tc); batch axis "parallel", time axis "arbitrary".
# ---------------------------------------------------------------------------
def _lstm_recurrent_kernel(xw_ref, whh_ref, h0_ref, c0_ref,
                           outs_ref, cT_ref,
                           h_scr, c_scr):
    t = pl.program_id(1)                      # time-chunk index (sequential)
    Tc, Bt, Hp = outs_ref.shape

    # (Re-)initialize the recurrent state at the first time chunk of each
    # batch block.
    @pl.when(t == 0)
    def _():
        h_scr[...] = h0_ref[...]
        c_scr[...] = c0_ref[...]

    def _sigmoid(z):
        # EUP-friendly: a single tanh instead of exp + divide.
        return 0.5 * (jnp.tanh(0.5 * z) + 1.0)

    w_dtype = whh_ref.dtype

    def step(i, carry):
        h, c = carry                          # f32 (Bt, Hp)
        # Only the h-path matmul is left inside the serial loop; the x-path
        # was precomputed by _input_proj_kernel and arrives via xw_ref.
        gates = xw_ref[i] + jnp.dot(h.astype(w_dtype), whh_ref[...],
                                    preferred_element_type=jnp.float32)
        i_g = _sigmoid(gates[:, 0 * Hp:1 * Hp])     # lane-aligned slices
        f_g = _sigmoid(gates[:, 1 * Hp:2 * Hp])
        g_g = jnp.tanh(gates[:, 2 * Hp:3 * Hp])
        o_g = _sigmoid(gates[:, 3 * Hp:4 * Hp])
        c_new = f_g * c + i_g * g_g
        h_new = o_g * jnp.tanh(c_new)
        outs_ref[i] = h_new                    # lane-dense (Hp % 128 == 0)
        return (h_new, c_new)

    h, c = jax.lax.fori_loop(0, Tc, step, (h_scr[...], c_scr[...]),
                             unroll=Tc <= 16)

    h_scr[...] = h
    c_scr[...] = c

    @pl.when(t == pl.num_programs(1) - 1)
    def _():
        cT_ref[...] = c


# ---------------------------------------------------------------------------
# Wrapper
# ---------------------------------------------------------------------------
def lstm_layer(x, h0, c0, w_ih, w_hh, b_ih, b_hh, *,
               max_time_chunk=8, batch_blocks=1,
               mxu_dtype=jnp.bfloat16):
    """LSTMLayer forward.

    x: (T, B, D), h0/c0: (B, H), w_ih: (4H, D), w_hh: (4H, H), b_*: (4H,).
    Returns (outs (T, B, H), (h_T, c_T)).

    batch_blocks: set to 2 on v7x (2 TensorCores) when B is large enough; the
    batch grid axis is marked "parallel" so it is sharded across cores.
    """
    f32 = jnp.float32
    T, B, D = x.shape
    H = h0.shape[-1]

    # ---- padded / aligned sizes --------------------------------------------
    Hp = _round_up(H, 128)                    # lane-aligned gates & stores
    Bp = _round_up(B, 8)                      # sublane-aligned batch
    Tc = _largest_divisor_leq(T, max_time_chunk)
    nt = T // Tc
    nb = batch_blocks if (batch_blocks > 1 and Bp % (8 * batch_blocks) == 0) else 1
    Bt = Bp // nb

    # ---- weights: pre-transpose, pad each gate group's H -> Hp -------------
    w_ih_g = jnp.asarray(w_ih, f32).reshape(4, H, D)
    w_ih_g = jnp.pad(w_ih_g, ((0, 0), (0, Hp - H), (0, 0)))
    wih_t = jnp.transpose(w_ih_g, (2, 0, 1)).reshape(D, 4 * Hp).astype(mxu_dtype)

    w_hh_g = jnp.asarray(w_hh, f32).reshape(4, H, H)
    w_hh_g = jnp.pad(w_hh_g, ((0, 0), (0, Hp - H), (0, Hp - H)))
    whh_t = jnp.transpose(w_hh_g, (2, 0, 1)).reshape(Hp, 4 * Hp).astype(mxu_dtype)

    bias = (jnp.asarray(b_ih, f32) + jnp.asarray(b_hh, f32)).reshape(4, H)
    bias = jnp.pad(bias, ((0, 0), (0, Hp - H))).reshape(1, 4 * Hp)

    # ---- activations / state: pad batch & hidden, bf16 feed for the MXU ----
    x_p = jnp.pad(jnp.asarray(x, f32), ((0, 0), (0, Bp - B), (0, 0)))
    x_p = x_p.astype(mxu_dtype)
    h0_p = jnp.pad(jnp.asarray(h0, f32), ((0, Bp - B), (0, Hp - H)))
    c0_p = jnp.pad(jnp.asarray(c0, f32), ((0, Bp - B), (0, Hp - H)))

    compiler_params = pltpu.CompilerParams(
        dimension_semantics=("parallel",),
        vmem_limit_bytes=64 * 1024 * 1024)

    # ---- Kernel 1: one big matmul for the x projection ---------------------
    M = T * Bp
    TM = min(512, _round_up(M, 8))
    Mp = _round_up(M, TM)
    x_flat = x_p.reshape(M, D)
    x_flat = jnp.pad(x_flat, ((0, Mp - M), (0, 0)))

    xw_flat = pl.pallas_call(
        _input_proj_kernel,
        out_shape=jax.ShapeDtypeStruct((Mp, 4 * Hp), f32),
        grid_spec=pltpu.PrefetchScalarGridSpec(
            num_scalar_prefetch=0,
            grid=(Mp // TM,),
            in_specs=[
                pl.BlockSpec((TM, D), lambda m: (m, 0)),
                pl.BlockSpec((D, 4 * Hp), lambda m: (0, 0)),
                pl.BlockSpec((1, 4 * Hp), lambda m: (0, 0)),
            ],
            out_specs=pl.BlockSpec((TM, 4 * Hp), lambda m: (m, 0)),
        ),
        compiler_params=compiler_params,
    )(x_flat, wih_t, bias)

    xw = xw_flat[:M].reshape(T, Bp, 4 * Hp)

    # ---- Kernel 2: the serial recurrence ------------------------------------
    grid_spec = pltpu.PrefetchScalarGridSpec(
        num_scalar_prefetch=0,
        grid=(nb, nt),
        in_specs=[
            pl.BlockSpec((Tc, Bt, 4 * Hp), lambda b, t: (t, b, 0)),  # xw chunk
            pl.BlockSpec((Hp, 4 * Hp), lambda b, t: (0, 0)),         # W_hh^T
            pl.BlockSpec((Bt, Hp), lambda b, t: (b, 0)),             # h0
            pl.BlockSpec((Bt, Hp), lambda b, t: (b, 0)),             # c0
        ],
        out_specs=[
            pl.BlockSpec((Tc, Bt, Hp), lambda b, t: (t, b, 0)),      # outs
            pl.BlockSpec((Bt, Hp), lambda b, t: (b, 0)),             # c_T
        ],
        scratch_shapes=[
            pltpu.VMEM((Bt, Hp), jnp.float32),                       # h state
            pltpu.VMEM((Bt, Hp), jnp.float32),                       # c state
        ],
    )

    outs_p, cT_p = pl.pallas_call(
        _lstm_recurrent_kernel,
        out_shape=(
            jax.ShapeDtypeStruct((T, Bp, Hp), f32),
            jax.ShapeDtypeStruct((Bp, Hp), f32),
        ),
        grid_spec=grid_spec,
        compiler_params=pltpu.CompilerParams(
            dimension_semantics=("parallel", "arbitrary"),
            vmem_limit_bytes=64 * 1024 * 1024),
    )(xw, whh_t, h0_p, c0_p)

    outs = outs_p[:, :B, :H]
    hT = outs[-1]
    cT = cT_p[:B, :H]
    return outs, (hT, cT)


# ---------------------------------------------------------------------------
# Pure-JAX reference (matches the PyTorch module semantics).
# ---------------------------------------------------------------------------
def _lstm_layer_ref(x, h0, c0, w_ih, w_hh, b_ih, b_hh):
    H = h0.shape[-1]

    def step(carry, x_t):
        h, c = carry
        gates = x_t @ w_ih.T + b_ih + h @ w_hh.T + b_hh
        i = jax.nn.sigmoid(gates[:, 0 * H:1 * H])
        f = jax.nn.sigmoid(gates[:, 1 * H:2 * H])
        g = jnp.tanh(gates[:, 2 * H:3 * H])
        o = jax.nn.sigmoid(gates[:, 3 * H:4 * H])
        c_new = f * c + i * g
        h_new = o * jnp.tanh(c_new)
        return (h_new, c_new), h_new

    (hT, cT), outs = jax.lax.scan(step, (h0, c0), x)
    return outs, (hT, cT)


if __name__ == "__main__":
    T, B, D, H = 16, 8, 16, 32

    key = jax.random.PRNGKey(0)
    kx, kh, kc, k1, k2, k3, k4 = jax.random.split(key, 7)
    x = jax.random.normal(kx, (T, B, D), jnp.float32)
    h0 = jax.random.normal(kh, (B, H), jnp.float32)
    c0 = jax.random.normal(kc, (B, H), jnp.float32)
    w_ih = jax.random.normal(k1, (4 * H, D), jnp.float32) * 0.1
    w_hh = jax.random.normal(k2, (4 * H, H), jnp.float32) * 0.1
    b_ih = jax.random.normal(k3, (4 * H,), jnp.float32) * 0.1
    b_hh = jax.random.normal(k4, (4 * H,), jnp.float32) * 0.1

    outs, (hT, cT) = lstm_layer(x, h0, c0, w_ih, w_hh, b_ih, b_hh)
    jax.block_until_ready((outs, hT, cT))

    outs_r, (hT_r, cT_r) = _lstm_layer_ref(x, h0, c0, w_ih, w_hh, b_ih, b_hh)
    # bf16 MXU operands -> looser tolerance vs. the pure-f32 reference.
    assert jnp.allclose(outs, outs_r, atol=3e-2, rtol=3e-2), \
        float(jnp.max(jnp.abs(outs - outs_r)))
    assert jnp.allclose(hT, hT_r, atol=3e-2, rtol=3e-2)
    assert jnp.allclose(cT, cT_r, atol=3e-2, rtol=3e-2)

    print("KERNEL_OK")
</pallas_src>

<mosaic_0001>
module attributes {stable_mosaic.version = 11 : i64} {
  func.func @_input_proj_kernel(%arg0: i32, %arg1: memref<128x16xbf16, #tpu.memory_space<vmem>>, %arg2: memref<16x512xbf16, #tpu.memory_space<vmem>>, %arg3: memref<1x512xf32, #tpu.memory_space<vmem>>, %arg4: memref<128x512xf32, #tpu.memory_space<vmem>>) attributes {dimension_semantics = [#tpu.dimension_semantics<parallel>], iteration_bounds = array<i64: 1>, scalar_prefetch = 0 : i64, scratch_operands = 0 : i64, tpu.core_type = #tpu.core_type<tc>, window_params = [{transform_indices = @transform_0, window_bounds = array<i64: 128, 16>}, {pipeline_mode = #tpu.pipeline_mode<synchronous>, transform_indices = @transform_1, window_bounds = array<i64: 16, 512>}, {pipeline_mode = #tpu.pipeline_mode<synchronous>, transform_indices = @transform_2, window_bounds = array<i64: 1, 512>}, {transform_indices = @transform_3, window_bounds = array<i64: 128, 512>}]} {
    %c0 = arith.constant 0 : index
    %c0_0 = arith.constant 0 : index
    %0 = vector.load %arg1[%c0, %c0_0] : memref<128x16xbf16, #tpu.memory_space<vmem>>, vector<128x16xbf16>
    %c0_1 = arith.constant 0 : index
    %c0_2 = arith.constant 0 : index
    %1 = vector.load %arg2[%c0_1, %c0_2] : memref<16x512xbf16, #tpu.memory_space<vmem>>, vector<16x512xbf16>
    %cst = arith.constant dense<0.000000e+00> : vector<128x512xf32>
    %2 = tpu.matmul %0, %1, %cst {dimension_numbers = #tpu.dot_dimension_numbers<[1], [0], [0], [1], [0, 0, 1, 1], [], []>} : vector<128x16xbf16>, vector<16x512xbf16>, vector<128x512xf32> -> vector<128x512xf32>
    %c0_3 = arith.constant 0 : index
    %c0_4 = arith.constant 0 : index
    %3 = vector.load %arg3[%c0_3, %c0_4] : memref<1x512xf32, #tpu.memory_space<vmem>>, vector<1x512xf32>
    %4 = vector.broadcast %3 : vector<1x512xf32> to vector<128x512xf32>
    %5 = arith.addf %2, %4 : vector<128x512xf32>
    %c0_5 = arith.constant 0 : index
    %c0_6 = arith.constant 0 : index
    %6 = vector.load %arg4[%c0_5, %c0_6] : memref<128x512xf32, #tpu.memory_space<vmem>>, vector<128x512xf32>
    tpu.vector_store %arg4[%c0_5, %c0_6], %5 {strides = array<i32>} : memref<128x512xf32, #tpu.memory_space<vmem>>, vector<128x512xf32>,
    return
  }
  func.func @transform_0(%arg0: i32) -> (i32, i32) {
    %c0_i32 = arith.constant 0 : i32
    %c0_i32_0 = arith.constant 0 : i32
    return %arg0, %c0_i32 : i32, i32
  }
  func.func @transform_1(%arg0: i32) -> (i32, i32) {
    %c0_i32 = arith.constant 0 : i32
    %c0_i32_0 = arith.constant 0 : i32
    %c0_i32_1 = arith.constant 0 : i32
    return %c0_i32, %c0_i32_0 : i32, i32
  }
  func.func @transform_2(%arg0: i32) -> (i32, i32) {
    %c0_i32 = arith.constant 0 : i32
    %c0_i32_0 = arith.constant 0 : i32
    %c0_i32_1 = arith.constant 0 : i32
    return %c0_i32, %c0_i32_0 : i32, i32
  }
  func.func @transform_3(%arg0: i32) -> (i32, i32) {
    %c0_i32 = arith.constant 0 : i32
    %c0_i32_0 = arith.constant 0 : i32
    return %arg0, %c0_i32 : i32, i32
  }
}

</mosaic_0001>

<bundles_post_ra>
// kernel: tpu_custom_call.1
= control target key start
LH: loop header
LB: loop body
LE: loop exit
PB: predicated region body
PF: predicated region fallthrough
CT: control target
= control target key end

     0   :  { %vm106_vm0 = vcmask 130048   ;;  %s711_s0 = inlined_call_operand.vmem [shape: bf16[128,16], index: 0, kind: input, shape index: {}]   ;;  %s712_s1 = inlined_call_operand.vmem [shape: bf16[16,512], index: 1, kind: input, shape index: {}]   ;;  %s713_s2 = inlined_call_operand.vmem [shape: f32[1,512], index: 2, kind: input, shape index: {}]   ;;  %s714_s3 = inlined_call_operand.hbm [shape: f32[128,512], index: 3, kind: output, shape index: {}]  }
   0x1   :  { %v443_v0 = vld [vmem:[%s712_s1] sm:$0xf]  ;;  %v499_v1 = vld [vmem:[%s712_s1 + $0xc] sm:$0xf0]  ;;  %v497_v2 = vld [vmem:[%s712_s1 + $0x4] sm:$0xf] }
   0x2   :  { %v444_v3 = vor.u32 %v499_v1, %v443_v0  ;;  %v445_v4 = vld [vmem:[%s712_s1 + $0x10] sm:$0xf0]  ;;  %v451_v5 = vld [vmem:[%s712_s1 + $0x8] sm:$0xf]  ;;  %v500_v6 = vld [vmem:[%s712_s1 + $0x14] sm:$0xf0] }
   0x3   :  { %v448_v7 = vor.u32 %v497_v2, %v445_v4  ;;  %v452_v8 = vor.u32 %v500_v6, %v451_v5  ;;  %v498_v9 = vld [vmem:[%s712_s1 + $0xc] sm:$0xf]  ;;  %v453_v10 = vld [vmem:[%s712_s1 + $0x18] sm:$0xf0]  ;;  %v489_v11 = vld [vmem:[%s711_s0] sm:$0xff] }
   0x4   :  { %138 = vmatpush.bf16.msra.mxu0 %v444_v3  ;;  %v456_v12 = vor.u32 %v498_v9, %v453_v10 }
   0x5   :  { %8 = vsyncpa [#allocation3], 0  ;;  %187 = vmatpush.bf16.msra.mxu1 %v448_v7  ;;  %236 = vmatpush.bf16.msra.mxu2 %v452_v8  ;;  %v490_v13 = vld [vmem:[%s711_s0 + $0x8] sm:$0xff]  ;;  %v491_v14 = vld [vmem:[%s711_s0 + $0x10] sm:$0xff]  ;;  %s397_s20 = sshll.u32 %s714_s3, 4  ;;  %s531_s21 = smov 512   ;;  %s398_s20 = int_to_ptr.hbm [resolvable:$true] %s397_s20 }
   0x6   :  { %285 = vmatpush.bf16.msra.mxu3 %v456_v12  ;;  %v492_v15 = vld [vmem:[%s711_s0 + $0x18] sm:$0xff]  ;;  %v493_v16 = vld [vmem:[%s711_s0 + $0x20] sm:$0xff]  ;;  %v494_v17 = vld [vmem:[%s711_s0 + $0x28] sm:$0xff]  ;;  %s532_s22 = smov 32  }
   0x7   :  { %457 = vmatmul.msk.bf16.vlgmr.msra.gmra.mxu0 %vm106_vm0, %v489_v11  ;;  %v495_v18 = vld [vmem:[%s711_s0 + $0x30] sm:$0xff]  ;;  %v496_v19 = vld [vmem:[%s711_s0 + $0x38] sm:$0xff]  ;;  %v36_v20 = vld [vmem:[%s713_s2] sm:$0xf]  ;;  %s530_s0 = smov [#allocation2]  }
   0x8   :  { %465 = vmatmul.msk.bf16.vlgmr.msra.gmra.mxu1 %vm106_vm0, %v489_v11  ;;  %473 = vmatmul.msk.bf16.vlgmr.msra.gmra.mxu2 %vm106_vm0, %v489_v11  ;;  %v636_v21 = vperm.slane %v36_v20, 0  ;;  %v638_v22 = vperm.slane %v36_v20, 1  ;;  %v642_v27 = vperm.slane %v36_v20, 2  ;;  %v644_v28 = vperm.slane %v36_v20, 3  ;;  %s395_s2 = sshll.u32 %s530_s0, 4  ;;  %s396_s2 = int_to_ptr.vmem [resolvable:$true] %s395_s2 }
   0x9   :  { %481 = vmatmul.msk.bf16.vlgmr.msra.gmra.mxu3 %vm106_vm0, %v489_v11 }
  0x17   :  { %458 = vmatmul.msk.bf16.gmra.mxu0 %vm106_vm0, %v490_v13 }
  0x18   :  { %466 = vmatmul.msk.bf16.gmra.mxu1 %vm106_vm0, %v490_v13  ;;  %474 = vmatmul.msk.bf16.gmra.mxu2 %vm106_vm0, %v490_v13 }
  0x19   :  { %482 = vmatmul.msk.bf16.gmra.mxu3 %vm106_vm0, %v490_v13 }
  0x27   :  { %459 = vmatmul.msk.bf16.gmra.mxu0 %vm106_vm0, %v491_v14 }
  0x28   :  { %467 = vmatmul.msk.bf16.gmra.mxu1 %vm106_vm0, %v491_v14  ;;  %475 = vmatmul.msk.bf16.gmra.mxu2 %vm106_vm0, %v491_v14 }
  0x29   :  { %483 = vmatmul.msk.bf16.gmra.mxu3 %vm106_vm0, %v491_v14 }
  0x37   :  { %460 = vmatmul.msk.bf16.gmra.mxu0 %vm106_vm0, %v492_v15 }
  0x38   :  { %468 = vmatmul.msk.bf16.gmra.mxu1 %vm106_vm0, %v492_v15  ;;  %476 = vmatmul.msk.bf16.gmra.mxu2 %vm106_vm0, %v492_v15 }
  0x39   :  { %484 = vmatmul.msk.bf16.gmra.mxu3 %vm106_vm0, %v492_v15 }
  0x47   :  { %461 = vmatmul.msk.bf16.gmra.mxu0 %vm106_vm0, %v493_v16 }
  0x48   :  { %469 = vmatmul.msk.bf16.gmra.mxu1 %vm106_vm0, %v493_v16  ;;  %477 = vmatmul.msk.bf16.gmra.mxu2 %vm106_vm0, %v493_v16 }
  0x49   :  { %485 = vmatmul.msk.bf16.gmra.mxu3 %vm106_vm0, %v493_v16 }
  0x57   :  { %462 = vmatmul.msk.bf16.gmra.mxu0 %vm106_vm0, %v494_v17 }
  0x58   :  { %470 = vmatmul.msk.bf16.gmra.mxu1 %vm106_vm0, %v494_v17  ;;  %478 = vmatmul.msk.bf16.gmra.mxu2 %vm106_vm0, %v494_v17 }
  0x59   :  { %486 = vmatmul.msk.bf16.gmra.mxu3 %vm106_vm0, %v494_v17 }
  0x67   :  { %463 = vmatmul.msk.bf16.gmra.mxu0 %vm106_vm0, %v495_v18 }
  0x68   :  { %471 = vmatmul.msk.bf16.gmra.mxu1 %vm106_vm0, %v495_v18  ;;  %479 = vmatmul.msk.bf16.gmra.mxu2 %vm106_vm0, %v495_v18 }
  0x69   :  { %487 = vmatmul.msk.bf16.gmra.mxu3 %vm106_vm0, %v495_v18 }
  0x77   :  { %464 = vmatmul.msk.bf16.gmra.mxu0 %vm106_vm0, %v496_v19 }
  0x78   :  { %472 = vmatmul.msk.bf16.gmra.mxu1 %vm106_vm0, %v496_v19  ;;  %480 = vmatmul.msk.bf16.gmra.mxu2 %vm106_vm0, %v496_v19 }
  0x79   :  { %488 = vmatmul.msk.bf16.gmra.mxu3 %vm106_vm0, %v496_v19 }
  0x84   :  { %v140_v23 = vpop.f32.mrf.mxu0 }
  0x85   :  { %v141_v24 = vadd.f32 %v140_v23, %v636_v21  ;;  %v189_v25 = vpop.f32.mrf.mxu1 }
  0x86   :  { %v190_v26 = vadd.f32 %v189_v25, %v638_v22 }
  0x87   :  { %327 = vst [vmem:[#allocation2] sm:$0xff] %v141_v24 }
  0x88   :  { %328 = vst [vmem:[#allocation2 + $0x8] sm:$0xff] %v190_v26 }
  0x8b   :  { %v238_v29 = vpop.f32.mrf.mxu2 }
  0x8c   :  { %v239_v30 = vadd.f32 %v238_v29, %v642_v27  ;;  %v287_v31 = vpop.f32.mrf.mxu3  ;;  %v142_v32 = vpop.f32.mrf.mxu0 }
  0x8d   :  { %v288_v33 = vadd.f32 %v287_v31, %v644_v28  ;;  %v143_v34 = vadd.f32 %v142_v32, %v636_v21  ;;  %v191_v35 = vpop.f32.mrf.mxu1 }
  0x8e   :  { %329 = vst [vmem:[#allocation2 + $0x10] sm:$0xff] %v239_v30  ;;  %v192_v36 = vadd.f32 %v191_v35, %v638_v22 }
  0x8f   :  { %330 = vst [vmem:[#allocation2 + $0x18] sm:$0xff] %v288_v33 }
  0x90   :  { %331 = vst [vmem:[#allocation2 + $0x20] sm:$0xff] %v143_v34 }
  0x91   :  { %332 = vst [vmem:[#allocation2 + $0x28] sm:$0xff] %v192_v36 }
  0x93   :  { %v240_v37 = vpop.f32.mrf.mxu2 }
  0x94   :  { %v241_v38 = vadd.f32 %v240_v37, %v642_v27  ;;  %v289_v39 = vpop.f32.mrf.mxu3  ;;  %v145_v40 = vpop.f32.mrf.mxu0 }
  0x95   :  { %v290_v41 = vadd.f32 %v289_v39, %v644_v28  ;;  %v146_v42 = vadd.f32 %v145_v40, %v636_v21  ;;  %v194_v43 = vpop.f32.mrf.mxu1 }
  0x96   :  { %333 = vst [vmem:[#allocation2 + $0x30] sm:$0xff] %v241_v38  ;;  %v195_v44 = vadd.f32 %v194_v43, %v638_v22 }
  0x97   :  { %334 = vst [vmem:[#allocation2 + $0x38] sm:$0xff] %v290_v41 }
  0x98   :  { %335 = vst [vmem:[#allocation2 + $0x40] sm:$0xff] %v146_v42 }
  0x99   :  { %336 = vst [vmem:[#allocation2 + $0x48] sm:$0xff] %v195_v44 }
  0x9b   :  { %v243_v45 = vpop.f32.mrf.mxu2 }
  0x9c   :  { %v244_v46 = vadd.f32 %v243_v45, %v642_v27  ;;  %v292_v47 = vpop.f32.mrf.mxu3  ;;  %v147_v48 = vpop.f32.mrf.mxu0 }
  0x9d   :  { %v293_v49 = vadd.f32 %v292_v47, %v644_v28  ;;  %v148_v50 = vadd.f32 %v147_v48, %v636_v21  ;;  %v196_v51 = vpop.f32.mrf.mxu1 }
  0x9e   :  { %337 = vst [vmem:[#allocation2 + $0x50] sm:$0xff] %v244_v46  ;;  %v197_v52 = vadd.f32 %v196_v51, %v638_v22 }
  0x9f   :  { %338 = vst [vmem:[#allocation2 + $0x58] sm:$0xff] %v293_v49 }
  0xa0   :  { %339 = vst [vmem:[#allocation2 + $0x60] sm:$0xff] %v148_v50 }
  0xa1   :  { %340 = vst [vmem:[#allocation2 + $0x68] sm:$0xff] %v197_v52 }
  0xa3   :  { %v245_v53 = vpop.f32.mrf.mxu2 }
  0xa4   :  { %v246_v54 = vadd.f32 %v245_v53, %v642_v27  ;;  %v294_v55 = vpop.f32.mrf.mxu3  ;;  %v150_v56 = vpop.f32.mrf.mxu0 }
  0xa5   :  { %v295_v57 = vadd.f32 %v294_v55, %v644_v28  ;;  %v151_v58 = vadd.f32 %v150_v56, %v636_v21  ;;  %v199_v59 = vpop.f32.mrf.mxu1 }
  0xa6   :  { %341 = vst [vmem:[#allocation2 + $0x70] sm:$0xff] %v246_v54  ;;  %v200_v60 = vadd.f32 %v199_v59, %v638_v22 }
  0xa7   :  { %342 = vst [vmem:[#allocation2 + $0x78] sm:$0xff] %v295_v57 }
  0xa8   :  { %343 = vst [vmem:[#allocation2 + $0x80] sm:$0xff] %v151_v58 }
  0xa9   :  { %344 = vst [vmem:[#allocation2 + $0x88] sm:$0xff] %v200_v60 }
  0xab   :  { %v248_v61 = vpop.f32.mrf.mxu2 }
  0xac   :  { %v249_v62 = vadd.f32 %v248_v61, %v642_v27  ;;  %v297_v63 = vpop.f32.mrf.mxu3  ;;  %v152_v0 = vpop.f32.mrf.mxu0 }
  0xad   :  { %v298_v1 = vadd.f32 %v297_v63, %v644_v28  ;;  %v153_v2 = vadd.f32 %v152_v0, %v636_v21  ;;  %v201_v3 = vpop.f32.mrf.mxu1 }
  0xae   :  { %345 = vst [vmem:[#allocation2 + $0x90] sm:$0xff] %v249_v62  ;;  %v202_v4 = vadd.f32 %v201_v3, %v638_v22 }
  0xaf   :  { %346 = vst [vmem:[#allocation2 + $0x98] sm:$0xff] %v298_v1 }
  0xb0   :  { %347 = vst [vmem:[#allocation2 + $0xa0] sm:$0xff] %v153_v2 }
  0xb1   :  { %348 = vst [vmem:[#allocation2 + $0xa8] sm:$0xff] %v202_v4 }
  0xb3   :  { %v250_v5 = vpop.f32.mrf.mxu2 }
  0xb4   :  { %v251_v6 = vadd.f32 %v250_v5, %v642_v27  ;;  %v299_v7 = vpop.f32.mrf.mxu3  ;;  %v155_v8 = vpop.f32.mrf.mxu0 }
  0xb5   :  { %v300_v9 = vadd.f32 %v299_v7, %v644_v28  ;;  %v156_v10 = vadd.f32 %v155_v8, %v636_v21  ;;  %v204_v11 = vpop.f32.mrf.mxu1 }
  0xb6   :  { %349 = vst [vmem:[#allocation2 + $0xb0] sm:$0xff] %v251_v6  ;;  %v205_v12 = vadd.f32 %v204_v11, %v638_v22 }
  0xb7   :  { %350 = vst [vmem:[#allocation2 + $0xb8] sm:$0xff] %v300_v9 }
  0xb8   :  { %351 = vst [vmem:[#allocation2 + $0xc0] sm:$0xff] %v156_v10 }
  0xb9   :  { %352 = vst [vmem:[#allocation2 + $0xc8] sm:$0xff] %v205_v12 }
  0xbb   :  { %v253_v13 = vpop.f32.mrf.mxu2 }
  0xbc   :  { %v254_v14 = vadd.f32 %v253_v13, %v642_v27  ;;  %v302_v15 = vpop.f32.mrf.mxu3  ;;  %v157_v16 = vpop.f32.mrf.mxu0 }
  0xbd   :  { %v303_v17 = vadd.f32 %v302_v15, %v644_v28  ;;  %v158_v18 = vadd.f32 %v157_v16, %v636_v21  ;;  %v206_v19 = vpop.f32.mrf.mxu1 }
  0xbe   :  { %353 = vst [vmem:[#allocation2 + $0xd0] sm:$0xff] %v254_v14  ;;  %v207_v20 = vadd.f32 %v206_v19, %v638_v22 }
  0xbf   :  { %354 = vst [vmem:[#allocation2 + $0xd8] sm:$0xff] %v303_v17 }
  0xc0   :  { %355 = vst [vmem:[#allocation2 + $0xe0] sm:$0xff] %v158_v18 }
  0xc1   :  { %356 = vst [vmem:[#allocation2 + $0xe8] sm:$0xff] %v207_v20 }
  0xc3   :  { %v255_v23 = vpop.f32.mrf.mxu2 }
  0xc4   :  { %v256_v24 = vadd.f32 %v255_v23, %v642_v27  ;;  %v304_v25 = vpop.f32.mrf.mxu3  ;;  %v160_v26 = vpop.f32.mrf.mxu0 }
  0xc5   :  { %v305_v29 = vadd.f32 %v304_v25, %v644_v28  ;;  %v161_v30 = vadd.f32 %v160_v26, %v636_v21  ;;  %v209_v31 = vpop.f32.mrf.mxu1 }
  0xc6   :  { %357 = vst [vmem:[#allocation2 + $0xf0] sm:$0xff] %v256_v24  ;;  %v210_v32 = vadd.f32 %v209_v31, %v638_v22 }
  0xc7   :  { %358 = vst [vmem:[#allocation2 + $0xf8] sm:$0xff] %v305_v29 }
  0xc8   :  { %359 = vst [vmem:[#allocation2 + $0x100] sm:$0xff] %v161_v30 }
  0xc9   :  { %360 = vst [vmem:[#allocation2 + $0x108] sm:$0xff] %v210_v32 }
  0xcb   :  { %v258_v33 = vpop.f32.mrf.mxu2 }
  0xcc   :  { %v259_v34 = vadd.f32 %v258_v33, %v642_v27  ;;  %v307_v35 = vpop.f32.mrf.mxu3  ;;  %v162_v36 = vpop.f32.mrf.mxu0 }
  0xcd   :  { %v308_v37 = vadd.f32 %v307_v35, %v644_v28  ;;  %v163_v38 = vadd.f32 %v162_v36, %v636_v21  ;;  %v211_v39 = vpop.f32.mrf.mxu1 }
  0xce   :  { %361 = vst [vmem:[#allocation2 + $0x110] sm:$0xff] %v259_v34  ;;  %v212_v40 = vadd.f32 %v211_v39, %v638_v22 }
  0xcf   :  { %362 = vst [vmem:[#allocation2 + $0x118] sm:$0xff] %v308_v37 }
  0xd0   :  { %363 = vst [vmem:[#allocation2 + $0x120] sm:$0xff] %v163_v38 }
  0xd1   :  { %364 = vst [vmem:[#allocation2 + $0x128] sm:$0xff] %v212_v40 }
  0xd3   :  { %v260_v41 = vpop.f32.mrf.mxu2 }
  0xd4   :  { %v261_v42 = vadd.f32 %v260_v41, %v642_v27  ;;  %v309_v43 = vpop.f32.mrf.mxu3  ;;  %v165_v44 = vpop.f32.mrf.mxu0 }
  0xd5   :  { %v310_v45 = vadd.f32 %v309_v43, %v644_v28  ;;  %v166_v46 = vadd.f32 %v165_v44, %v636_v21  ;;  %v214_v47 = vpop.f32.mrf.mxu1 }
  0xd6   :  { %365 = vst [vmem:[#allocation2 + $0x130] sm:$0xff] %v261_v42  ;;  %v215_v48 = vadd.f32 %v214_v47, %v638_v22 }
  0xd7   :  { %366 = vst [vmem:[#allocation2 + $0x138] sm:$0xff] %v310_v45 }
  0xd8   :  { %367 = vst [vmem:[#allocation2 + $0x140] sm:$0xff] %v166_v46 }
  0xd9   :  { %368 = vst [vmem:[#allocation2 + $0x148] sm:$0xff] %v215_v48 }
  0xdb   :  { %v263_v49 = vpop.f32.mrf.mxu2 }
  0xdc   :  { %v264_v50 = vadd.f32 %v263_v49, %v642_v27  ;;  %v312_v51 = vpop.f32.mrf.mxu3  ;;  %v167_v52 = vpop.f32.mrf.mxu0 }
  0xdd   :  { %v313_v53 = vadd.f32 %v312_v51, %v644_v28  ;;  %v168_v54 = vadd.f32 %v167_v52, %v636_v21  ;;  %v216_v55 = vpop.f32.mrf.mxu1 }
  0xde   :  { %369 = vst [vmem:[#allocation2 + $0x150] sm:$0xff] %v264_v50  ;;  %v217_v56 = vadd.f32 %v216_v55, %v638_v22 }
  0xdf   :  { %370 = vst [vmem:[#allocation2 + $0x158] sm:$0xff] %v313_v53 }
  0xe0   :  { %371 = vst [vmem:[#allocation2 + $0x160] sm:$0xff] %v168_v54 }
  0xe1   :  { %372 = vst [vmem:[#allocation2 + $0x168] sm:$0xff] %v217_v56 }
  0xe3   :  { %v265_v57 = vpop.f32.mrf.mxu2 }
  0xe4   :  { %v266_v58 = vadd.f32 %v265_v57, %v642_v27  ;;  %v314_v59 = vpop.f32.mrf.mxu3  ;;  %v170_v60 = vpop.f32.mrf.mxu0 }
  0xe5   :  { %v315_v61 = vadd.f32 %v314_v59, %v644_v28  ;;  %v171_v62 = vadd.f32 %v170_v60, %v636_v21  ;;  %v219_v63 = vpop.f32.mrf.mxu1 }
  0xe6   :  { %373 = vst [vmem:[#allocation2 + $0x170] sm:$0xff] %v266_v58  ;;  %v220_v0 = vadd.f32 %v219_v63, %v638_v22 }
  0xe7   :  { %374 = vst [vmem:[#allocation2 + $0x178] sm:$0xff] %v315_v61 }
  0xe8   :  { %375 = vst [vmem:[#allocation2 + $0x180] sm:$0xff] %v171_v62 }
  0xe9   :  { %376 = vst [vmem:[#allocation2 + $0x188] sm:$0xff] %v220_v0 }
  0xeb   :  { %v268_v1 = vpop.f32.mrf.mxu2 }
  0xec   :  { %v269_v2 = vadd.f32 %v268_v1, %v642_v27  ;;  %v317_v3 = vpop.f32.mrf.mxu3  ;;  %v172_v4 = vpop.f32.mrf.mxu0 }
  0xed   :  { %v318_v5 = vadd.f32 %v317_v3, %v644_v28  ;;  %v173_v6 = vadd.f32 %v172_v4, %v636_v21  ;;  %v221_v7 = vpop.f32.mrf.mxu1 }
  0xee   :  { %377 = vst [vmem:[#allocation2 + $0x190] sm:$0xff] %v269_v2  ;;  %v222_v8 = vadd.f32 %v221_v7, %v638_v22 }
  0xef   :  { %378 = vst [vmem:[#allocation2 + $0x198] sm:$0xff] %v318_v5 }
  0xf0   :  { %379 = vst [vmem:[#allocation2 + $0x1a0] sm:$0xff] %v173_v6 }
  0xf1   :  { %380 = vst [vmem:[#allocation2 + $0x1a8] sm:$0xff] %v222_v8 }
  0xf3   :  { %v270_v9 = vpop.f32.mrf.mxu2 }
  0xf4   :  { %v271_v10 = vadd.f32 %v270_v9, %v642_v27  ;;  %v319_v11 = vpop.f32.mrf.mxu3  ;;  %v175_v12 = vpop.f32.mrf.mxu0 }
  0xf5   :  { %v320_v13 = vadd.f32 %v319_v11, %v644_v28  ;;  %v176_v14 = vadd.f32 %v175_v12, %v636_v21  ;;  %v224_v15 = vpop.f32.mrf.mxu1 }
  0xf6   :  { %381 = vst [vmem:[#allocation2 + $0x1b0] sm:$0xff] %v271_v10  ;;  %v225_v16 = vadd.f32 %v224_v15, %v638_v22 }
  0xf7   :  { %382 = vst [vmem:[#allocation2 + $0x1b8] sm:$0xff] %v320_v13 }
  0xf8   :  { %383 = vst [vmem:[#allocation2 + $0x1c0] sm:$0xff] %v176_v14 }
  0xf9   :  { %384 = vst [vmem:[#allocation2 + $0x1c8] sm:$0xff] %v225_v16 }
  0xfb   :  { %v273_v17 = vpop.f32.mrf.mxu2 }
  0xfc   :  { %v274_v18 = vadd.f32 %v273_v17, %v642_v27  ;;  %v322_v19 = vpop.f32.mrf.mxu3  ;;  %v177_v20 = vpop.f32.mrf.mxu0 }
  0xfd   :  { %v323_v23 = vadd.f32 %v322_v19, %v644_v28  ;;  %v178_v24 = vadd.f32 %v177_v20, %v636_v21  ;;  %v226_v25 = vpop.f32.mrf.mxu1 }
  0xfe   :  { %385 = vst [vmem:[#allocation2 + $0x1d0] sm:$0xff] %v274_v18  ;;  %v227_v26 = vadd.f32 %v226_v25, %v638_v22 }
  0xff   :  { %386 = vst [vmem:[#allocation2 + $0x1d8] sm:$0xff] %v323_v23 }
 0x100   :  { %387 = vst [vmem:[#allocation2 + $0x1e0] sm:$0xff] %v178_v24 }
 0x101   :  { %388 = vst [vmem:[#allocation2 + $0x1e8] sm:$0xff] %v227_v26 }
 0x103   :  { %v275_v29 = vpop.f32.mrf.mxu2 }
 0x104   :  { %v276_v30 = vadd.f32 %v275_v29, %v642_v27  ;;  %v324_v31 = vpop.f32.mrf.mxu3 }
 0x105   :  { %v325_v21 = vadd.f32 %v324_v31, %v644_v28 }
 0x106   :  { %389 = vst [vmem:[#allocation2 + $0x1f0] sm:$0xff] %v276_v30 }
 0x107   :  { %390 = vst [vmem:[#allocation2 + $0x1f8] sm:$0xff] %v325_v21 }
 0x108   :  { %403 = dma.vmem_to_hbm [thread:$0]  %s396_s2, 8192, %s398_s20, [#allocation3], %s531_s21, %s531_s21, %s532_s22  }
 0x109   :  { %528 = dma.done.wait [#allocation3], 8192  }
 0x10a   :  { %529 = vsyncadd [#allocation3], 4294959104 }
 0x10b   :  { %408 = vsyncpa [#allocation3], 1 }

</bundles_post_ra>
